<compile_context>
chip_gen: v5e
topology: v5e:2x2
jax: 0.10.0
libtpu: 0.0.40
codegen_flags: <defaults>
</compile_context>

<pallas_src>
import functools

import jax
import jax.numpy as jnp
from jax.experimental import pallas as pl
from jax.experimental.pallas import tpu as pltpu


_VMEM_BLOCK_BUDGET = 2 * 1024 * 1024  # bytes per pipelined block (per buffer)


def _pick_tile(total_rows, bytes_per_row, budget=_VMEM_BLOCK_BUDGET):
    """Largest divisor of `total_rows` whose block stays under `budget` bytes."""
    best = 1
    for cand in range(1, total_rows + 1):
        if total_rows % cand == 0 and cand * bytes_per_row <= budget:
            best = cand
    return best


# ---------------------------------------------------------------------------
# 1x1 conv only (target size already matches): row-tiled MXU matmul
# ---------------------------------------------------------------------------
def _conv1x1_kernel(x_ref, w_ref, b_ref, o_ref):
    o_ref[...] = (jnp.dot(x_ref[...], w_ref[...],
                          preferred_element_type=jnp.float32)
                  + b_ref[...]).astype(o_ref.dtype)


def conv1x1_nhwc(x, w, b, tm=512):
    n, h, wd, cin = x.shape
    cout = w.shape[1]
    m = n * h * wd
    xf = x.reshape(m, cin)
    tm = min(tm, pl.cdiv(m, 8) * 8)
    mp = pl.cdiv(m, tm) * tm
    if mp != m:
        xf = jnp.pad(xf, ((0, mp - m), (0, 0)))
    out = pl.pallas_call(
        _conv1x1_kernel,
        out_shape=jax.ShapeDtypeStruct((mp, cout), x.dtype),
        grid=(mp // tm,),
        in_specs=[pl.BlockSpec((tm, cin), lambda i: (i, 0)),
                  pl.BlockSpec((cin, cout), lambda i: (0, 0)),
                  pl.BlockSpec((1, cout), lambda i: (0, 0))],
        out_specs=pl.BlockSpec((tm, cout), lambda i: (i, 0)),
        compiler_params=pltpu.CompilerParams(dimension_semantics=("parallel",)),
    )(xf, w, b.reshape(1, cout))
    return out[:m].reshape(n, h, wd, cout)


# ---------------------------------------------------------------------------
# fused (optional 1x1 conv) + max_pool2d(kernel=k+1, stride=k, padding=1)
# ---------------------------------------------------------------------------
def _pool_kernel(*refs, k, is_conv):
    """refs (conv): x, prev_row, w, b, out, hp_scratch
       refs (no conv): x, prev_row, out, hp_scratch

    x:    (1, tht*k, W, Cin)  input rows feeding this tile's output rows
    prev: (1, 1, W, Cin)      input row (tile_start*k - 1); row 0 on tile 0
    out:  (1, tht, tw, Cout)
    hp:   (tht, W, Cout)      VMEM scratch holding the H-pooled rows
    """
    if is_conv:
        x_ref, prev_ref, w_ref, b_ref, o_ref, hp_ref = refs
    else:
        x_ref, prev_ref, o_ref, hp_ref = refs
    tht, tw = o_ref.shape[1], o_ref.shape[2]
    hb, wd, cin = x_ref.shape[1], x_ref.shape[2], x_ref.shape[3]

    x = x_ref[0]
    pr = prev_ref[0]
    if is_conv:
        w = w_ref[...]
        bias = b_ref[...]
        cout = w.shape[1]
        x = (jnp.dot(x.reshape(hb * wd, cin), w,
                     preferred_element_type=jnp.float32) + bias
             ).reshape(hb, wd, cout)
        pr = (jnp.dot(pr.reshape(wd, cin), w,
                      preferred_element_type=jnp.float32) + bias
              ).reshape(1, wd, cout)
    else:
        cout = cin
        x = x.astype(jnp.float32)
        pr = pr.astype(jnp.float32)

    # On the first H tile the "previous row" is the -inf padding row of the
    # pool; on later tiles it is the real last row of the previous tile.
    limit = jnp.where(pl.program_id(1) == 0, -jnp.inf, jnp.inf)
    pr = jnp.minimum(pr, limit)

    # ---- pool along H: out_row[i] = max(x[i*k-1], x[i*k], ..., x[i*k+k-1])
    xr = x.reshape(tht, k, wd, cout)          # split a *major* dim: free
    body = xr[:, 0]
    for d in range(1, k):
        body = jnp.maximum(body, xr[:, d])
    if tht > 1:
        upper = jnp.concatenate([pr, xr[:tht - 1, k - 1]], axis=0)
    else:
        upper = pr
    hp_ref[...] = jnp.maximum(body, upper)    # (tht, W, Cout) f32

    # ---- pool along W via strided reads of the H-pooled scratch
    bodyw = hp_ref[:, pl.ds(0, tw, stride=k), :]
    for d in range(1, k):
        bodyw = jnp.maximum(bodyw, hp_ref[:, pl.ds(d, tw, stride=k), :])
    o_ref[0] = bodyw.astype(o_ref.dtype)
    if tw > 1:
        # left neighbour (column j*k - 1) exists for output columns j >= 1;
        # column 0's left neighbour is the -inf pad (no contribution).
        leftw = hp_ref[:, pl.ds(k - 1, tw - 1, stride=k), :]
        o_ref[0, :, 1:, :] = jnp.maximum(bodyw[:, 1:, :], leftw).astype(o_ref.dtype)


def maxpool_down_fused(x, th, tw, w=None, b=None):
    n, h, wd, cin = x.shape
    assert h % th == 0 and wd % tw == 0
    k = wd // tw
    # The torch module derives the kernel from W and reuses it for H.
    assert h // th == k, "unequal H/W downsample ratios are not supported"
    is_conv = w is not None
    cout = w.shape[1] if is_conv else cin
    itemsize = jnp.dtype(x.dtype).itemsize
    bytes_per_out_row = k * wd * (cin * itemsize + cout * 4)
    tht = _pick_tile(th, bytes_per_out_row)            # output rows per step
    grid = (n, th // tht)

    in_specs = [
        pl.BlockSpec((1, tht * k, wd, cin), lambda bi, i: (bi, i, 0, 0)),
        pl.BlockSpec((1, 1, wd, cin),
                     lambda bi, i: (bi, jnp.maximum(i * tht * k - 1, 0), 0, 0)),
    ]
    args = [x, x]
    if is_conv:
        in_specs += [pl.BlockSpec((cin, cout), lambda bi, i: (0, 0)),
                     pl.BlockSpec((1, cout), lambda bi, i: (0, 0))]
        args += [w, b.reshape(1, cout)]

    return pl.pallas_call(
        functools.partial(_pool_kernel, k=k, is_conv=is_conv),
        out_shape=jax.ShapeDtypeStruct((n, th, tw, cout), x.dtype),
        grid=grid,
        in_specs=in_specs,
        out_specs=pl.BlockSpec((1, tht, tw, cout), lambda bi, i: (bi, i, 0, 0)),
        scratch_shapes=[pltpu.VMEM((tht, wd, cout), jnp.float32)],
        compiler_params=pltpu.CompilerParams(
            dimension_semantics=("parallel", "parallel")),
    )(*args)


# ---------------------------------------------------------------------------
# fused (optional 1x1 conv) + nearest upsample by integer factors
# ---------------------------------------------------------------------------
def _up_kernel(*refs, sh, sw, is_conv):
    """Output array is viewed as (N, th, W, sw*Cout) (free reshape of NHWC),
    so W replication is lane replication and the store is one dense block."""
    if is_conv:
        x_ref, w_ref, b_ref, o_ref = refs
    else:
        x_ref, o_ref = refs
    hb, wd, cin = x_ref.shape[1], x_ref.shape[2], x_ref.shape[3]
    x = x_ref[0]
    if is_conv:
        crep = w_ref.shape[1]                  # = sw * Cout (weights pre-tiled)
        t = (jnp.dot(x.reshape(hb * wd, cin), w_ref[...],
                     preferred_element_type=jnp.float32) + b_ref[...]
             ).reshape(hb, wd, crep).astype(o_ref.dtype)
    else:
        t = x
        if sw > 1:                             # replicate channels along lanes
            t = jnp.concatenate([t] * sw, axis=-1)
    if sh > 1:                                 # replicate rows: new major dim
        crep = t.shape[-1]
        t = jnp.broadcast_to(t[:, None], (hb, sh, wd, crep)).reshape(
            hb * sh, wd, crep)
    o_ref[0] = t


def nearest_up_fused(x, th, tw, w=None, b=None):
    n, h, wd, cin = x.shape
    # TODO(synk): non-integer nearest scale factors not implemented (BiFPN
    # only resamples between pyramid levels, i.e. integer factors).
    assert th % h == 0 and tw % wd == 0
    sh, sw = th // h, tw // wd
    is_conv = w is not None
    cout = w.shape[1] if is_conv else cin
    itemsize = jnp.dtype(x.dtype).itemsize
    bytes_per_in_row = wd * itemsize * (cin + sh * sw * cout)
    hb = _pick_tile(h, bytes_per_in_row)               # input rows per step
    grid = (n, h // hb)

    in_specs = [pl.BlockSpec((1, hb, wd, cin), lambda bi, i: (bi, i, 0, 0))]
    args = [x]
    if is_conv:
        # fold W-replication into the weights: out lane d*Cout + c <- w[:, c]
        w_rep = jnp.tile(w, (1, sw))
        b_rep = jnp.tile(b.reshape(1, cout), (1, sw))
        in_specs += [pl.BlockSpec((cin, sw * cout), lambda bi, i: (0, 0)),
                     pl.BlockSpec((1, sw * cout), lambda bi, i: (0, 0))]
        args += [w_rep, b_rep]

    out = pl.pallas_call(
        functools.partial(_up_kernel, sh=sh, sw=sw, is_conv=is_conv),
        out_shape=jax.ShapeDtypeStruct((n, th, wd, sw * cout), x.dtype),
        grid=grid,
        in_specs=in_specs,
        out_specs=pl.BlockSpec((1, hb * sh, wd, sw * cout),
                               lambda bi, i: (bi, i, 0, 0)),
        compiler_params=pltpu.CompilerParams(
            dimension_semantics=("parallel", "parallel")),
    )(*args)
    # free reshape: (N, th, W, sw*Cout) -> (N, th, W*sw, Cout) == NHWC output
    return out.reshape(n, th, tw, cout)


# ---------------------------------------------------------------------------
# Resample module
# ---------------------------------------------------------------------------
class Resample:
    """Pallas port of mmdet BiFPN Resample (apply_bn=False path)."""

    def __init__(self, in_channels, out_channels, target_size, norm_cfg=None,
                 apply_bn=False, *, key):
        self.target_size = (target_size, target_size)
        self.is_conv = in_channels != out_channels
        # TODO(synk): apply_bn=True (BatchNorm inside ConvModule) not implemented.
        assert not apply_bn
        self.w = self.b = None
        if self.is_conv:
            kw, kb = jax.random.split(key)
            bound = 1.0 / (in_channels ** 0.5)
            # PyTorch weight is (Cout, Cin, 1, 1); stored here as (Cin, Cout).
            self.w = jax.random.uniform(kw, (in_channels, out_channels),
                                        jnp.float32, -bound, bound)
            self.b = jax.random.uniform(kb, (out_channels,), jnp.float32,
                                        -bound, bound)

    def __call__(self, x_nchw):
        th, tw = self.target_size
        n, c, h, w = x_nchw.shape
        if not self.is_conv and (h, w) == (th, tw):
            return x_nchw                                    # pure identity
        # NCHW -> NHWC once at the boundary so channels sit on the lane axis.
        # TODO(synk): fold these layout transposes into the kernels as well.
        x = jnp.transpose(x_nchw, (0, 2, 3, 1))
        if (h, w) == (th, tw):
            out = conv1x1_nhwc(x, self.w, self.b)
        elif (h, w) < (th, tw):      # lexicographic, matching torch.Size compare
            out = nearest_up_fused(x, th, tw, self.w, self.b)
        else:
            out = maxpool_down_fused(x, th, tw, self.w, self.b)
        return jnp.transpose(out, (0, 3, 1, 2))              # NHWC -> NCHW


# ---------------------------------------------------------------------------
# pure-JAX reference (for correctness check)
# ---------------------------------------------------------------------------
def _ref_resample(x_nchw, mod: Resample):
    x = x_nchw
    if mod.is_conv:
        x = jnp.einsum('nchw,cd->ndhw', x, mod.w) + mod.b[None, :, None, None]
    th, tw = mod.target_size
    h, w = x.shape[2], x.shape[3]
    if (h, w) == (th, tw):
        return x
    if (h, w) < (th, tw):
        ih = (jnp.arange(th) * h) // th
        iw = (jnp.arange(tw) * w) // tw
        return x[:, :, ih][:, :, :, iw]
    k = w // tw
    return jax.lax.reduce_window(
        x, -jnp.inf, jax.lax.max,
        window_dimensions=(1, 1, k + 1, k + 1),
        window_strides=(1, 1, k, k),
        padding=((0, 0), (0, 0), (1, 1), (1, 1)))


if __name__ == "__main__":
    key = jax.random.PRNGKey(0)
    kx, kp, kx2 = jax.random.split(key, 3)

    x = jax.random.normal(kx, (2, 4, 16, 16), jnp.float32)    # NCHW
    x2 = jax.random.normal(kx2, (2, 4, 16, 16), jnp.float32)

    def check(mod, inp, tol):
        got = jax.block_until_ready(mod(inp))
        want = _ref_resample(inp, mod)
        assert got.shape == want.shape, (got.shape, want.shape)
        err = float(jnp.max(jnp.abs(got - want)))
        assert jnp.allclose(got, want, rtol=tol, atol=tol), err
        return got

    # 1) conv (4->8 channels) + max-pool downsample 16x16 -> 8x8
    check(Resample(4, 8, target_size=8, key=kp), x, 1e-2)
    # 2) no conv, nearest upsample 16x16 -> 32x32
    check(Resample(4, 4, target_size=32, key=kp), x2, 1e-5)
    # 3) identity (same size, same channels)
    y3 = jax.block_until_ready(Resample(4, 4, target_size=16, key=kp)(x2))
    assert y3.shape == (2, 4, 16, 16)
    assert jnp.allclose(y3, x2)
    # 4) conv (4->8), same spatial size
    check(Resample(4, 8, target_size=16, key=kp), x, 1e-2)
    # 5) no conv, max-pool downsample 16x16 -> 8x8
    check(Resample(4, 4, target_size=8, key=kp), x2, 1e-5)
    # 6) conv (4->8) + nearest upsample 16x16 -> 32x32
    check(Resample(4, 8, target_size=32, key=kp), x, 1e-2)

    print("KERNEL_OK")
</pallas_src>

<mosaic_0001>
module attributes {stable_mosaic.version = 11 : i64} {
  func.func @_pool_kernel(%arg0: i32, %arg1: i32, %arg2: memref<1x16x16x4xf32, #tpu.memory_space<vmem>>, %arg3: memref<1x1x16x4xf32, #tpu.memory_space<vmem>>, %arg4: memref<4x8xf32, #tpu.memory_space<vmem>>, %arg5: memref<1x8xf32, #tpu.memory_space<vmem>>, %arg6: memref<1x8x8x8xf32, #tpu.memory_space<vmem>>, %arg7: memref<8x16x8xf32, #tpu.memory_space<vmem>>) attributes {dimension_semantics = [#tpu.dimension_semantics<parallel>, #tpu.dimension_semantics<parallel>], iteration_bounds = array<i64: 2, 1>, scalar_prefetch = 0 : i64, scratch_operands = 1 : i64, tpu.core_type = #tpu.core_type<tc>, window_params = [{transform_indices = @transform_0, window_bounds = array<i64: 1, 16, 16, 4>}, {transform_indices = @transform_1, window_bounds = array<i64: 1, 1, 16, 4>}, {pipeline_mode = #tpu.pipeline_mode<synchronous>, transform_indices = @transform_2, window_bounds = array<i64: 4, 8>}, {pipeline_mode = #tpu.pipeline_mode<synchronous>, transform_indices = @transform_3, window_bounds = array<i64: 1, 8>}, {transform_indices = @transform_4, window_bounds = array<i64: 1, 8, 8, 8>}]} {
    %c0 = arith.constant 0 : index
    %c0_0 = arith.constant 0 : index
    %c0_1 = arith.constant 0 : index
    %c0_2 = arith.constant 0 : index
    %0 = vector.load %arg2[%c0, %c0_0, %c0_1, %c0_2] : memref<1x16x16x4xf32, #tpu.memory_space<vmem>>, vector<1x16x16x4xf32>
    %1 = vector.shape_cast %0 : vector<1x16x16x4xf32> to vector<16x16x4xf32>
    %c0_3 = arith.constant 0 : index
    %c0_4 = arith.constant 0 : index
    %c0_5 = arith.constant 0 : index
    %c0_6 = arith.constant 0 : index
    %2 = vector.load %arg3[%c0_3, %c0_4, %c0_5, %c0_6] : memref<1x1x16x4xf32, #tpu.memory_space<vmem>>, vector<1x1x16x4xf32>
    %3 = vector.shape_cast %2 : vector<1x1x16x4xf32> to vector<1x16x4xf32>
    %c0_7 = arith.constant 0 : index
    %c0_8 = arith.constant 0 : index
    %4 = vector.load %arg4[%c0_7, %c0_8] : memref<4x8xf32, #tpu.memory_space<vmem>>, vector<4x8xf32>
    %c0_9 = arith.constant 0 : index
    %c0_10 = arith.constant 0 : index
    %5 = vector.load %arg5[%c0_9, %c0_10] : memref<1x8xf32, #tpu.memory_space<vmem>>, vector<1x8xf32>
    %6 = vector.shape_cast %1 : vector<16x16x4xf32> to vector<256x4xf32>
    %cst = arith.constant dense<0.000000e+00> : vector<256x8xf32>
    %7 = tpu.matmul %6, %4, %cst {dimension_numbers = #tpu.dot_dimension_numbers<[1], [0], [0], [1], [0, 0, 1, 1], [], []>} : vector<256x4xf32>, vector<4x8xf32>, vector<256x8xf32> -> vector<256x8xf32>
    %8 = vector.broadcast %5 : vector<1x8xf32> to vector<256x8xf32>
    %9 = arith.addf %7, %8 : vector<256x8xf32>
    %10 = vector.shape_cast %9 : vector<256x8xf32> to vector<16x16x8xf32>
    %11 = vector.shape_cast %3 : vector<1x16x4xf32> to vector<16x4xf32>
    %cst_11 = arith.constant dense<0.000000e+00> : vector<16x8xf32>
    %12 = tpu.matmul %11, %4, %cst_11 {dimension_numbers = #tpu.dot_dimension_numbers<[1], [0], [0], [1], [0, 0, 1, 1], [], []>} : vector<16x4xf32>, vector<4x8xf32>, vector<16x8xf32> -> vector<16x8xf32>
    %13 = vector.broadcast %5 : vector<1x8xf32> to vector<16x8xf32>
    %14 = arith.addf %12, %13 : vector<16x8xf32>
    %15 = vector.shape_cast %14 : vector<16x8xf32> to vector<1x16x8xf32>
    %c0_i32 = arith.constant 0 : i32
    %16 = arith.cmpi eq, %arg1, %c0_i32 : i32
    %cst_12 = arith.constant 0xFF800000 : f32
    %cst_13 = arith.constant 0x7F800000 : f32
    %17 = arith.select %16, %cst_12, %cst_13 : f32
    %18 = vector.broadcast %17 : f32 to vector<1x16x8xf32>
    %19 = arith.minimumf %15, %18 : vector<1x16x8xf32>
    %20 = vector.shape_cast %10 : vector<16x16x8xf32> to vector<8x2x16x8xf32>
    %21 = vector.extract_strided_slice %20 {offsets = [0, 0, 0, 0], sizes = [8, 1, 16, 8], strides = [1, 1, 1, 1]} : vector<8x2x16x8xf32> to vector<8x1x16x8xf32>
    %22 = vector.shape_cast %21 : vector<8x1x16x8xf32> to vector<8x16x8xf32>
    %23 = vector.extract_strided_slice %20 {offsets = [0, 1, 0, 0], sizes = [8, 1, 16, 8], strides = [1, 1, 1, 1]} : vector<8x2x16x8xf32> to vector<8x1x16x8xf32>
    %24 = vector.shape_cast %23 : vector<8x1x16x8xf32> to vector<8x16x8xf32>
    %25 = arith.maximumf %22, %24 : vector<8x16x8xf32>
    %26 = vector.extract_strided_slice %20 {offsets = [0, 1, 0, 0], sizes = [7, 1, 16, 8], strides = [1, 1, 1, 1]} : vector<8x2x16x8xf32> to vector<7x1x16x8xf32>
    %27 = vector.shape_cast %26 : vector<7x1x16x8xf32> to vector<7x16x8xf32>
    %28 = tpu.concatenate %19, %27 in 0 : vector<1x16x8xf32>, vector<7x16x8xf32> -> vector<8x16x8xf32>
    %29 = arith.maximumf %25, %28 : vector<8x16x8xf32>
    %c0_14 = arith.constant 0 : index
    %c0_15 = arith.constant 0 : index
    %c0_16 = arith.constant 0 : index
    %30 = vector.load %arg7[%c0_14, %c0_15, %c0_16] : memref<8x16x8xf32, #tpu.memory_space<vmem>>, vector<8x16x8xf32>
    tpu.vector_store %arg7[%c0_14, %c0_15, %c0_16], %29 {strides = array<i32>} : memref<8x16x8xf32, #tpu.memory_space<vmem>>, vector<8x16x8xf32>,
    %c0_17 = arith.constant 0 : index
    %c0_18 = arith.constant 0 : index
    %c0_19 = arith.constant 0 : index
    %31 = tpu.strided_load %arg7[%c0_17, %c0_18, %c0_19] {strides = array<i32: 1, 2, 1>} : memref<8x16x8xf32, #tpu.memory_space<vmem>>, vector<8x8x8xf32>
    %c0_20 = arith.constant 0 : index
    %c1 = arith.constant 1 : index
    %c0_21 = arith.constant 0 : index
    %32 = tpu.strided_load %arg7[%c0_20, %c1, %c0_21] {strides = array<i32: 1, 2, 1>} : memref<8x16x8xf32, #tpu.memory_space<vmem>>, vector<8x8x8xf32>
    %33 = arith.maximumf %31, %32 : vector<8x8x8xf32>
    %c0_22 = arith.constant 0 : index
    %c0_23 = arith.constant 0 : index
    %c0_24 = arith.constant 0 : index
    %c0_25 = arith.constant 0 : index
    %34 = vector.load %arg6[%c0_22, %c0_23, %c0_24, %c0_25] : memref<1x8x8x8xf32, #tpu.memory_space<vmem>>, vector<1x8x8x8xf32>
    %35 = vector.shape_cast %34 : vector<1x8x8x8xf32> to vector<8x8x8xf32>
    %36 = vector.shape_cast %33 : vector<8x8x8xf32> to vector<1x8x8x8xf32>
    tpu.vector_store %arg6[%c0_22, %c0_23, %c0_24, %c0_25], %36 {strides = array<i32>} : memref<1x8x8x8xf32, #tpu.memory_space<vmem>>, vector<1x8x8x8xf32>,
    %c0_26 = arith.constant 0 : index
    %c1_27 = arith.constant 1 : index
    %c0_28 = arith.constant 0 : index
    %37 = tpu.strided_load %arg7[%c0_26, %c1_27, %c0_28] {strides = array<i32: 1, 2, 1>} : memref<8x16x8xf32, #tpu.memory_space<vmem>>, vector<8x7x8xf32>
    %38 = vector.extract_strided_slice %33 {offsets = [0, 1, 0], sizes = [8, 7, 8], strides = [1, 1, 1]} : vector<8x8x8xf32> to vector<8x7x8xf32>
    %39 = arith.maximumf %38, %37 : vector<8x7x8xf32>
    %c0_29 = arith.constant 0 : index
    %c0_30 = arith.constant 0 : index
    %c1_31 = arith.constant 1 : index
    %c0_32 = arith.constant 0 : index
    %40 = vector.load %arg6[%c0_29, %c0_30, %c1_31, %c0_32] : memref<1x8x8x8xf32, #tpu.memory_space<vmem>>, vector<1x8x7x8xf32>
    %41 = vector.shape_cast %40 : vector<1x8x7x8xf32> to vector<8x7x8xf32>
    %42 = vector.shape_cast %39 : vector<8x7x8xf32> to vector<1x8x7x8xf32>
    tpu.vector_store %arg6[%c0_29, %c0_30, %c1_31, %c0_32], %42 {strides = array<i32>} : memref<1x8x8x8xf32, #tpu.memory_space<vmem>>, vector<1x8x7x8xf32>,
    return
  }
  func.func @transform_0(%arg0: i32, %arg1: i32) -> (i32, i32, i32, i32) {
    %c0_i32 = arith.constant 0 : i32
    %c0_i32_0 = arith.constant 0 : i32
    %c0_i32_1 = arith.constant 0 : i32
    return %arg0, %arg1, %c0_i32, %c0_i32_0 : i32, i32, i32, i32
  }
  func.func @transform_1(%arg0: i32, %arg1: i32) -> (i32, i32, i32, i32) {
    %c8_i32 = arith.constant 8 : i32
    %0 = arith.muli %arg1, %c8_i32 : i32
    %c2_i32 = arith.constant 2 : i32
    %1 = arith.muli %0, %c2_i32 : i32
    %c1_i32 = arith.constant 1 : i32
    %2 = arith.subi %1, %c1_i32 : i32
    %c0_i32 = arith.constant 0 : i32
    %3 = arith.maxsi %2, %c0_i32 : i32
    %c0_i32_0 = arith.constant 0 : i32
    %c0_i32_1 = arith.constant 0 : i32
    %c0_i32_2 = arith.constant 0 : i32
    return %arg0, %3, %c0_i32_0, %c0_i32_1 : i32, i32, i32, i32
  }
  func.func @transform_2(%arg0: i32, %arg1: i32) -> (i32, i32) {
    %c0_i32 = arith.constant 0 : i32
    %c0_i32_0 = arith.constant 0 : i32
    %c0_i32_1 = arith.constant 0 : i32
    return %c0_i32, %c0_i32_0 : i32, i32
  }
  func.func @transform_3(%arg0: i32, %arg1: i32) -> (i32, i32) {
    %c0_i32 = arith.constant 0 : i32
    %c0_i32_0 = arith.constant 0 : i32
    %c0_i32_1 = arith.constant 0 : i32
    return %c0_i32, %c0_i32_0 : i32, i32
  }
  func.func @transform_4(%arg0: i32, %arg1: i32) -> (i32, i32, i32, i32) {
    %c0_i32 = arith.constant 0 : i32
    %c0_i32_0 = arith.constant 0 : i32
    %c0_i32_1 = arith.constant 0 : i32
    return %arg0, %arg1, %c0_i32, %c0_i32_0 : i32, i32, i32, i32
  }
}

</mosaic_0001>

<bundles_post_ra>
// kernel: tpu_custom_call.1
= control target key start
LH: loop header
LB: loop body
LE: loop exit
PB: predicated region body
PF: predicated region fallthrough
CT: control target
= control target key end

     0   :  { %9 = vsyncpa [#allocation4], 0  ;;  %s1368_s0 = inlined_call_operand.vmem [shape: f32[2,16,16,4], index: 0, kind: input, shape index: {}]   ;;  %s1369_s1 = inlined_call_operand.vmem [shape: f32[2,16,16,4], index: 1, kind: input, shape index: {}]   ;;  %s1370_s2 = inlined_call_operand.vmem [shape: f32[4,8], index: 2, kind: input, shape index: {}]   ;;  %s1371_s3 = inlined_call_operand.vmem [shape: f32[1,8], index: 3, kind: input, shape index: {}]   ;;  %s1372_s4 = inlined_call_operand.hbm [shape: f32[2,8,8,8], index: 4, kind: output, shape index: {}]  }
   0x1   :  { %11 = vsyncpa [#allocation4 + $0x1], 0  ;;  %s1067_s15 = smov 0   ;;  %s1069_s16 = smov 0  }
   0x2   :  { %s1071_s17 = smov 0   ;;  %s1073_s18 = smov 0  }
   0x3   :  { %s1075_s19 = smov 0   ;;  %s1077_s20 = smov 0  }
   0x4 LB: > { %s845_s21 = sadd.s32 4294967295, %s1038_s20   ;;  %s846_s22 = sadd.s32 4294967294, %s1038_s20   ;;  %s1038_s20 = sphi %s1077_s20, %s17_s20   ;;  %s1034_s19 = sphi %s1075_s19, %s1379_s19   ;;  %s1030_s18 = sphi %s1073_s18, %s1378_s18   ;;  %s1026_s17 = sphi %s1071_s17, %s1377_s17   ;;  %s1022_s16 = sphi %s1069_s16, %s1376_s16   ;;  %s1018_s15 = sphi %s1067_s15, %s1375_s15  }
   0x5   : > { %s29_s23 = sadd.s32 1, %s1034_s19  ;;  %s144_s24 = sadd.s32 1, %s1026_s17 }
   0x6   : > { %p31_p0 = scmp.ge.s32.totalorder %s29_s23, 2  ;;  %p154_p1 = scmp.ne.s32.totalorder %s1026_s17, %s1022_s16 }
   0x7   : > { %p155_p2 = scmp.eq.s32.totalorder %s845_s21, 1  ;;  %p160_p3 = scmp.ne.s32.totalorder %s1022_s16, %s1018_s15 }
   0x8   : > { %s1381_s23 = smov (%p31_p0, %s29_s23), 0  ;;  %p161_p5 = scmp.eq.s32.totalorder %s846_s22, 1 }
   0x9   : > { %p1107_p4 = por %p155_p2, %p154_p1  ;;  %s139_s26 = ssub.s32 %s1034_s19, %s1381_s23 }
   0xa   : > { %p849_p6 = scmp.ge.s32.totalorder %s1038_s20, 1  ;;  %p142_p7 = scmp.eq.s32.totalorder %s139_s26, 0 }
   0xb   : > { %p1114_p8 = por %p161_p5, %p160_p3  ;;  %p219_p9 = scmp.lt.s32.totalorder %s1038_s20, 3 }
   0xc   : > { %s1120_s28 = scalar_select %p142_p7, %s1026_s17, %s144_s24  }
   0xd   : > { %p220_p10 = pnand %p849_p6, %p219_p9 }
   0xe   : > { %p264_p11 = scmp.lt.s32.totalorder (!%p220_p10), %s1030_s18, 1  ;;  %s260_s21 = sand.u32 (!%p220_p10), 1, %s1022_s16  }
   0xf   : > { %223 = sbr.rel (%p220_p10) target bundleno = 248 (0xf8), region = 36  ;;  %s850_s22 = sshll.u32 (!%p220_p10), %s260_s21, 6 }
  0x10   : > { %s1261_s24 = scalar_lea.vmem (!%p220_p10), [#allocation3], %s850_s22  ;;  %s898_s26 = sshll.u32 (!%p220_p10), %s1030_s18, 6 }
  0x11   : > { %s725_s7 = scalar_lea.sflag (!%p220_p10), [#allocation4], %s260_s21 }
  0x14   : > { %v326_v0 = vld [vmem:[%s1370_s2] sm:$0xf]  ;;  %vm428_vm0 = vcmask 1043456   ;;  %s1127_s5 = scalar_select %p264_p11, %s1030_s18, 1  ;;  %vm331_vm1 = vcmask 31744   ;;  %vm611_vm2 = vcmask 64512  }
  0x15   : > { %855 = vmatpush.msk.msra.mxu0 %vm428_vm0, %v326_v0  ;;  %899 = vmatpush.msk.msra.mxu1 %vm428_vm0, %v326_v0  ;;  %v1215_v45 = vld [vmem:[%s1371_s3] ss:$0 sm:$0xff]  ;;  %vm715_vm3 = vcmask 64513  }
  0x16   : > { %900 = vmatpush.msk.msra.mxu2 %vm428_vm0, %v326_v0  ;;  %901 = vmatpush.msk.msra.mxu3 %vm428_vm0, %v326_v0  ;;  %s896_s6 = sshll.u32 %s1127_s5, 8  ;;  %s738_s5 = scalar_lea.hbm %s1372_s4, %s898_s26 }
  0x17   : > { %888 = vmatpush.msk.msrb.mxu1 %vm428_vm0, %v326_v0  ;;  %s1135_s9 = scalar_lea.vmem %s1368_s0, %s896_s6  ;;  %s286_s12 = scalar_lea.vmem %s1369_s1, %s896_s6 }
  0x18   : > { %v292_v1 = vld [vmem:[%s1135_s9] sm:$0xff]  ;;  %v301_v2 = vld [vmem:[%s1135_s9 + $0x48] sm:$0xff]  ;;  %v306_v3 = vld [vmem:[%s1135_s9 + $0x70] sm:$0xff]  ;;  %s739_s6 = sshll.u32 %s1261_s24, 4  ;;  %s741_s18 = sshll.u32 %s738_s5, 4  ;;  %s740_s6 = int_to_ptr.vmem [resolvable:$true] %s739_s6  ;;  %s742_s18 = int_to_ptr.hbm [resolvable:$true] %s741_s18 }
  0x19   : > { %856 = vmatmul.msk.f32.vlgmr.msra.gmra.mxu0 %vm331_vm1, %v292_v1  ;;  %865 = vmatmul.msk.f32.vlgmr.msra.gmra.mxu1 %vm331_vm1, %v301_v2  ;;  %v315_v4 = vld [vmem:[%s1135_s9 + $0xb8] sm:$0xff]  ;;  %v293_v5 = vld [vmem:[%s1135_s9 + $0x8] sm:$0xff]  ;;  %v302_v6 = vld [vmem:[%s1135_s9 + $0x50] sm:$0xff]  ;;  %s974_s8 = sshra.s32 %s742_s18, 4  ;;  %s975_s8 = int_to_ptr.hbm [resolvable:$true] %s974_s8 }
  0x1a   : > { %870 = vmatmul.msk.f32.vlgmr.msra.gmra.mxu2 %vm331_vm1, %v306_v3  ;;  %879 = vmatmul.msk.f32.vlgmr.msra.gmra.mxu3 %vm331_vm1, %v315_v4  ;;  %v307_v7 = vld [vmem:[%s1135_s9 + $0x78] sm:$0xff]  ;;  %v316_v8 = vld [vmem:[%s1135_s9 + $0xc0] sm:$0xff]  ;;  %v294_v9 = vld [vmem:[%s1135_s9 + $0x10] sm:$0xff]  ;;  %p981_p1 = scmp.lt.s32.totalorder %s975_s8, %s1372_s4 }
  0x1b   : > { %v303_v10 = vld [vmem:[%s1135_s9 + $0x58] sm:$0xff]  ;;  %v308_v11 = vld [vmem:[%s1135_s9 + $0x80] sm:$0xff]  ;;  %v317_v12 = vld [vmem:[%s1135_s9 + $0xc8] sm:$0xff] }
  0x1c   : > { %v295_v13 = vld [vmem:[%s1135_s9 + $0x18] sm:$0xff]  ;;  %v304_v14 = vld [vmem:[%s1135_s9 + $0x60] sm:$0xff]  ;;  %v309_v15 = vld [vmem:[%s1135_s9 + $0x88] sm:$0xff] }
  0x1d   : > { %v318_v16 = vld [vmem:[%s1135_s9 + $0xd0] sm:$0xff]  ;;  %v296_v17 = vld [vmem:[%s1135_s9 + $0x20] sm:$0xff]  ;;  %v305_v18 = vld [vmem:[%s1135_s9 + $0x68] sm:$0xff] }
  0x1e   : > { %v310_v19 = vld [vmem:[%s1135_s9 + $0x90] sm:$0xff]  ;;  %v319_v20 = vld [vmem:[%s1135_s9 + $0xd8] sm:$0xff]  ;;  %v297_v21 = vld [vmem:[%s1135_s9 + $0x28] sm:$0xff] }
  0x1f   : > { %v324_v22 = vld [vmem:[%s286_s12] sm:$0xff]  ;;  %v311_v23 = vld [vmem:[%s1135_s9 + $0x98] sm:$0xff]  ;;  %v298_v25 = vld [vmem:[%s1135_s9 + $0x30] sm:$0xff] }
  0x20   : > { %v320_v24 = vld [vmem:[%s1135_s9 + $0xe0] sm:$0xff]  ;;  %v325_v26 = vld [vmem:[%s286_s12 + $0x8] sm:$0xff]  ;;  %v299_v29 = vld [vmem:[%s1135_s9 + $0x38] sm:$0xff]  ;;  %s980_s12 = scalar_lea.hbm %s1372_s4, 128 }
  0x21   : > { %857 = vmatmul.msk.f32.gmra.mxu0 %vm331_vm1, %v293_v5  ;;  %866 = vmatmul.msk.f32.gmra.mxu1 %vm331_vm1, %v302_v6  ;;  %v312_v27 = vld [vmem:[%s1135_s9 + $0xa0] sm:$0xff]  ;;  %v321_v28 = vld [vmem:[%s1135_s9 + $0xe8] sm:$0xff]  ;;  %v322_v31 = vld [vmem:[%s1135_s9 + $0xf0] sm:$0xff] }
  0x22   : > { %871 = vmatmul.msk.f32.gmra.mxu2 %vm331_vm1, %v307_v7  ;;  %880 = vmatmul.msk.f32.gmra.mxu3 %vm331_vm1, %v316_v8  ;;  %v313_v30 = vld [vmem:[%s1135_s9 + $0xa8] sm:$0xff]  ;;  %v300_v32 = vld [vmem:[%s1135_s9 + $0x40] sm:$0xff]  ;;  %v314_v33 = vld [vmem:[%s1135_s9 + $0xb0] sm:$0xff] }
  0x23   : > { %v323_v34 = vld [vmem:[%s1135_s9 + $0xf8] sm:$0xff]  ;;  %s976_s9 = scalar_lea.hbm %s975_s8, 64 }
  0x24   : > { %p977_p12 = scmp.ne.s32.totalorder %s975_s8, %s976_s9  ;;  %p982_p2 = scmp.lt.s32.totalorder %s980_s12, %s976_s9 }
  0x26   : > { %p978_p13 = pnand %p977_p12, %p1107_p4  ;;  %p983_p3 = por %p982_p2, %p981_p1 }
  0x28   : > { %p979_p0 = pneg %p978_p13 }
  0x29   : > { %858 = vmatmul.msk.f32.gmra.mxu0 %vm331_vm1, %v294_v9  ;;  %867 = vmatmul.msk.f32.gmra.mxu1 %vm331_vm1, %v303_v10 }
  0x2a   : > { %872 = vmatmul.msk.f32.gmra.mxu2 %vm331_vm1, %v308_v11  ;;  %881 = vmatmul.msk.f32.gmra.mxu3 %vm331_vm1, %v317_v12  ;;  %p984_p5 = pnand %p983_p3, %p979_p0 }
  0x31   : > { %859 = vmatmul.msk.f32.gmra.mxu0 %vm331_vm1, %v295_v13  ;;  %868 = vmatmul.msk.f32.gmra.mxu1 %vm331_vm1, %v304_v14 }
  0x32   : > { %873 = vmatmul.msk.f32.gmra.mxu2 %vm331_vm1, %v309_v15  ;;  %882 = vmatmul.msk.f32.gmra.mxu3 %vm331_vm1, %v318_v16 }
  0x39   : > { %860 = vmatmul.msk.f32.gmra.mxu0 %vm331_vm1, %v296_v17  ;;  %869 = vmatmul.msk.f32.gmra.mxu1 %vm331_vm1, %v305_v18 }
  0x3a   : > { %874 = vmatmul.msk.f32.gmra.mxu2 %vm331_vm1, %v310_v19  ;;  %883 = vmatmul.msk.f32.gmra.mxu3 %vm331_vm1, %v319_v20 }
  0x41   : > { %861 = vmatmul.msk.f32.gmra.mxu0 %vm331_vm1, %v297_v21  ;;  %889 = vmatmul.msk.f32.vlgmr.msrb.gmra.mxu1 %vm331_vm1, %v324_v22 }
  0x42   : > { %875 = vmatmul.msk.f32.gmra.mxu2 %vm331_vm1, %v311_v23  ;;  %884 = vmatmul.msk.f32.gmra.mxu3 %vm331_vm1, %v320_v24 }
  0x49   : > { %862 = vmatmul.msk.f32.gmra.mxu0 %vm331_vm1, %v298_v25  ;;  %890 = vmatmul.msk.f32.gmra.mxu1 %vm331_vm1, %v325_v26 }
  0x4a   : > { %876 = vmatmul.msk.f32.gmra.mxu2 %vm331_vm1, %v312_v27  ;;  %885 = vmatmul.msk.f32.gmra.mxu3 %vm331_vm1, %v321_v28 }
  0x51   : > { %863 = vmatmul.msk.f32.gmra.mxu0 %vm331_vm1, %v299_v29 }
  0x52   : > { %877 = vmatmul.msk.f32.gmra.mxu2 %vm331_vm1, %v313_v30  ;;  %886 = vmatmul.msk.f32.gmra.mxu3 %vm331_vm1, %v322_v31 }
  0x59   : > { %864 = vmatmul.msk.f32.gmra.mxu0 %vm331_vm1, %v300_v32 }
  0x5a   : > { %878 = vmatmul.msk.f32.gmra.mxu2 %vm331_vm1, %v314_v33  ;;  %887 = vmatmul.msk.f32.gmra.mxu3 %vm331_vm1, %v323_v34 }
  0x96   : > { %v449_v35 = vpop.f32.mrf.mxu0  ;;  %v1208_v36 = vpop.f32.mrf.mxu1 }
  0x97   : > { %v450_v9 = vadd.f32 %v1215_v45, %v449_v35 }
  0x9d   : > { %v491_v37 = vpop.f32.mrf.mxu2  ;;  %v518_v38 = vpop.f32.mrf.mxu3 }
  0x9e   : > { %v452_v39 = vpop.f32.mrf.mxu0  ;;  %v479_v40 = vpop.f32.mrf.mxu1  ;;  %v492_v50 = vadd.f32 %v1215_v45, %v491_v37  ;;  %v1246_v11 = vadd.f32 %v1215_v45, %v518_v38 }
  0x9f   : > { %v1219_v51 = vadd.f32 %v1215_v45, %v479_v40  ;;  %v453_v26 = vadd.f32 %v1215_v45, %v452_v39 }
  0xa5   : > { %v494_v41 = vpop.f32.mrf.mxu2  ;;  %v1210_v42 = vpop.f32.mrf.mxu3 }
  0xa6   : > { %v455_v43 = vpop.f32.mrf.mxu0  ;;  %v482_v44 = vpop.f32.mrf.mxu1  ;;  %v495_v59 = vadd.f32 %v1215_v45, %v494_v41 }
  0xa7   : > { %v1229_v61 = vadd.f32 %v1215_v45, %v482_v44  ;;  %v456_v0 = vadd.f32 %v1215_v45, %v455_v43  ;;  %v477_v43 = vadd.f32 %v1215_v45, %v1208_v36 }
  0xa9   : > { %v579_v14 = vmax.f32 %v450_v9, %v456_v0 }
  0xad   : > { %v497_v46 = vpop.f32.mrf.mxu2  ;;  %v524_v47 = vpop.f32.mrf.mxu3 }
  0xae   : > { %v458_v48 = vpop.f32.mrf.mxu0  ;;  %v485_v49 = vpop.f32.mrf.mxu1  ;;  %v498_v3 = vadd.f32 %v1215_v45, %v497_v46  ;;  %v525_v4 = vadd.f32 %v1215_v45, %v524_v47 }
  0xaf   : > { %v486_v52 = vadd.f32 %v1215_v45, %v485_v49  ;;  %v459_v21 = vadd.f32 %v1215_v45, %v458_v48 }
  0xb1   : > { %v585_v53 = vmax.f32 %v486_v52, %v492_v50  ;;  %v580_v38 = vmax.f32 %v453_v26, %v459_v21 }
  0xb3   : > { %v601_v54 = vmax.f32 %v585_v53, %v1219_v51 }
  0xb5   : > { %618 = vst.msk [vmem:[#allocation2 + $0x30] sm:$0xff] %vm611_vm2, %v601_v54  ;;  %v500_v55 = vpop.f32.mrf.mxu2  ;;  %v1224_v56 = vpop.f32.mrf.mxu3 }
  0xb6   : > { %v461_v57 = vpop.f32.mrf.mxu0  ;;  %v488_v58 = vpop.f32.mrf.mxu1  ;;  %v501_v27 = vadd.f32 %v1215_v45, %v500_v55 }
  0xb7   : > { %v489_v60 = vadd.f32 %v1215_v45, %v488_v58  ;;  %v462_v32 = vadd.f32 %v1215_v45, %v461_v57 }
  0xb9   : > { %v586_v62 = vmax.f32 %v489_v60, %v495_v59 }
  0xbb   : > { %v602_v63 = vmax.f32 %v586_v62, %v1229_v61 }
  0xbd   : > { %619 = vst.msk [vmem:[#allocation2 + $0x38] sm:$0xff] %vm611_vm2, %v602_v63  ;;  %v503_v1 = vpop.f32.mrf.mxu2  ;;  %v530_v2 = vpop.f32.mrf.mxu3 }
  0xbe   : > { %v1238_v5 = vadd.f32 %v1215_v45, %v503_v1  ;;  %v1241_v6 = vadd.f32 %v1215_v45, %v530_v2  ;;  %v464_v7 = vpop.f32.mrf.mxu0  ;;  %v568_v8 = vpop.f32.mrf.mxu1 }
  0xbf   : > { %v569_v10 = vadd.f32 %v1215_v45, %v568_v8  ;;  %v465_v52 = vadd.f32 %v1215_v45, %v464_v7 }
  0xc0   : > { %v587_v12 = vmax.f32 %v498_v3, %v1238_v5  ;;  %v592_v13 = vmax.f32 %v525_v4, %v1241_v6 }
  0xc1   : > { %v577_v15 = vmin.f32 %v569_v10, -inf }
  0xc2   : > { %v603_v16 = vmax.f32 %v587_v12, %v492_v50  ;;  %v608_v17 = vmax.f32 %v592_v13, %v1246_v11  ;;  %v584_v50 = vmax.f32 %v477_v43, %v1229_v61 }
  0xc3   : > { %v595_v18 = vmax.f32 %v579_v14, %v577_v15  ;;  %v528_v14 = vadd.f32 %v1215_v45, %v1224_v56 }
  0xc4   : > { %v634_v19 = vld [vmem:[#allocation2 + $0x30] ss:$2 sm:$0xff]  ;;  %v650_v20 = vld [vmem:[#allocation2 + $0x31] ss:$2 sm:$0xff]  ;;  %620 = vst.msk [vmem:[#allocation2 + $0x40] sm:$0xff] %vm611_vm2, %v603_v16 }
  0xc5   : > { %v662_v22 = vmax.f32 %v634_v19, %v650_v20  ;;  %v678_v23 = vld [vmem:[#allocation2 + $0x31] ss:$2 sm:$0x7f]  ;;  %625 = vst.msk [vmem:[#allocation2 + $0x68] sm:$0xff] %vm611_vm2, %v608_v17  ;;  %v506_v24 = vpop.f32.mrf.mxu2  ;;  %v533_v25 = vpop.f32.mrf.mxu3 }
  0xc6   : > { %v694_v28 = vrot.slane %v678_v23, 7  ;;  %612 = vst.msk [vmem:[#allocation2] sm:$0xff] %vm611_vm2, %v595_v18  ;;  %v507_v29 = vadd.f32 %v1215_v45, %v506_v24  ;;  %v467_v30 = vpop.f32.mrf.mxu0  ;;  %v571_v31 = vpop.f32.mrf.mxu1  ;;  %v534_v2 = vadd.f32 %v1215_v45, %v533_v25 }
  0xc7   : > { %670 = vst.msk [vmem:[%s1261_s24 + $0x18] sm:$0xff] %vm611_vm2, %v662_v22  ;;  %v468_v33 = vadd.f32 %v1215_v45, %v467_v30  ;;  %v572_v34 = vadd.f32 %v1215_v45, %v571_v31 }
  0xc8   : > { %v710_v35 = vmax.f32 %v662_v22, %v694_v28  ;;  %v588_v37 = vmax.f32 %v501_v27, %v507_v29 }
  0xc9   : > { %v581_v39 = vmax.f32 %v462_v32, %v468_v33  ;;  %v578_v40 = vmin.f32 %v572_v34, -inf }
  0xca   : > { %719 = vst.msk [vmem:[%s1261_s24 + $0x18] sm:$0xfe] %vm715_vm3, %v710_v35  ;;  %v604_v41 = vmax.f32 %v588_v37, %v495_v59 }
  0xcb   : > { %v597_v44 = vmax.f32 %v581_v39, %v456_v0  ;;  %v596_v46 = vmax.f32 %v580_v38, %v578_v40 }
  0xcc   : > { %621 = vst.msk [vmem:[#allocation2 + $0x48] sm:$0xff] %vm611_vm2, %v604_v41 }
  0xcd   : > { %614 = vst.msk [vmem:[#allocation2 + $0x10] sm:$0xff] %vm611_vm2, %v597_v44  ;;  %v509_v47 = vpop.f32.mrf.mxu2  ;;  %v536_v48 = vpop.f32.mrf.mxu3 }
  0xce   : > { %613 = vst.msk [vmem:[#allocation2 + $0x8] sm:$0xff] %vm611_vm2, %v596_v46  ;;  %v470_v49 = vpop.f32.mrf.mxu0  ;;  %v510_v24 = vadd.f32 %v1215_v45, %v509_v47 }
  0xcf   : > { %v471_v53 = vadd.f32 %v1215_v45, %v470_v49 }
  0xd1   : > { %v582_v54 = vmax.f32 %v465_v52, %v471_v53  ;;  %v600_v36 = vmax.f32 %v584_v50, %v471_v53 }
  0xd3   : > { %v636_v55 = vld [vmem:[#allocation2 + $0x40] ss:$2 sm:$0xff]  ;;  %v652_v57 = vld [vmem:[#allocation2 + $0x41] ss:$2 sm:$0xff]  ;;  %v598_v58 = vmax.f32 %v582_v54, %v459_v21  ;;  %617 = vst.msk [vmem:[#allocation2 + $0x28] sm:$0xff] %vm611_vm2, %v600_v36  ;;  %v522_v21 = vadd.f32 %v1215_v45, %v1210_v42  ;;  %v537_v42 = vadd.f32 %v1215_v45, %v536_v48 }
  0xd4   : > { %v663_v59 = vmax.f32 %v636_v55, %v652_v57  ;;  %v679_v60 = vld [vmem:[#allocation2 + $0x41] ss:$2 sm:$0x7f] }
  0xd5   : > { %v695_v62 = vrot.slane %v679_v60, 7  ;;  %v628_v63 = vld [vmem:[#allocation2] ss:$2 sm:$0xff]  ;;  %v644_v0 = vld [vmem:[#allocation2 + $0x1] ss:$2 sm:$0xff]  ;;  %615 = vst.msk [vmem:[#allocation2 + $0x18] sm:$0xff] %vm611_vm2, %v598_v58  ;;  %v512_v61 = vpop.f32.mrf.mxu2  ;;  %v539_v1 = vpop.f32.mrf.mxu3 }
  0xd6   : > { %671 = vst.msk [vmem:[%s1261_s24 + $0x20] sm:$0xff] %vm611_vm2, %v663_v59  ;;  %v659_v3 = vmax.f32 %v628_v63, %v644_v0  ;;  %v675_v4 = vld [vmem:[#allocation2 + $0x1] ss:$2 sm:$0x7f]  ;;  %v513_v7 = vadd.f32 %v1215_v45, %v512_v61  ;;  %v540_v8 = vadd.f32 %v1215_v45, %v539_v1  ;;  %v473_v9 = vpop.f32.mrf.mxu0 }
  0xd7   : > { %v711_v10 = vmax.f32 %v663_v59, %v695_v62  ;;  %v691_v12 = vrot.slane %v675_v4, 7  ;;  %v474_v13 = vadd.f32 %v1215_v45, %v473_v9 }
  0xd8   : > { %667 = vst.msk [vmem:[%s1261_s24] sm:$0xff] %vm611_vm2, %v659_v3  ;;  %v590_v15 = vmax.f32 %v513_v7, %v1246_v11  ;;  %v593_v16 = vmax.f32 %v534_v2, %v540_v8  ;;  %v591_v11 = vmax.f32 %v522_v21, %v528_v14 }
  0xd9   : > { %720 = vst.msk [vmem:[%s1261_s24 + $0x20] sm:$0xfe] %vm715_vm3, %v711_v10  ;;  %v707_v17 = vmax.f32 %v659_v3, %v691_v12  ;;  %v583_v18 = vmax.f32 %v474_v13, %v1219_v51 }
  0xda   : > { %v606_v19 = vmax.f32 %v590_v15, %v507_v29  ;;  %v609_v20 = vmax.f32 %v593_v16, %v528_v14 }
  0xdb   : > { %716 = vst.msk [vmem:[%s1261_s24] sm:$0xfe] %vm715_vm3, %v707_v17  ;;  %v599_v22 = vmax.f32 %v583_v18, %v468_v33 }
  0xdc   : > { %v630_v56 = vld [vmem:[#allocation2 + $0x10] ss:$2 sm:$0xff]  ;;  %v646_v23 = vld [vmem:[#allocation2 + $0x11] ss:$2 sm:$0xff]  ;;  %623 = vst.msk [vmem:[#allocation2 + $0x58] sm:$0xff] %vm611_vm2, %v606_v19 }
  0xdd   : > { %v660_v25 = vmax.f32 %v630_v56, %v646_v23  ;;  %v676_v26 = vld [vmem:[#allocation2 + $0x11] ss:$2 sm:$0x7f]  ;;  %626 = vst.msk [vmem:[#allocation2 + $0x70] sm:$0xff] %vm611_vm2, %v609_v20  ;;  %v515_v51 = vpop.f32.mrf.mxu2  ;;  %v542_v27 = vpop.f32.mrf.mxu3 }
  0xde   : > { %v692_v28 = vrot.slane %v676_v26, 7  ;;  %616 = vst.msk [vmem:[#allocation2 + $0x20] sm:$0xff] %vm611_vm2, %v599_v22  ;;  %v516_v29 = vadd.f32 %v1215_v45, %v515_v51  ;;  %v543_v30 = vadd.f32 %v1215_v45, %v542_v27 }
  0xdf   : > { %668 = vst.msk [vmem:[%s1261_s24 + $0x8] sm:$0xff] %vm611_vm2, %v660_v25 }
  0xe0   : > { %v708_v31 = vmax.f32 %v660_v25, %v692_v28  ;;  %v589_v32 = vmax.f32 %v510_v24, %v516_v29  ;;  %v607_v33 = vmax.f32 %v591_v11, %v516_v29  ;;  %v594_v34 = vmax.f32 %v537_v42, %v543_v30 }
  0xe2   : > { %717 = vst.msk [vmem:[%s1261_s24 + $0x8] sm:$0xfe] %vm715_vm3, %v708_v31  ;;  %v605_v35 = vmax.f32 %v589_v32, %v1238_v5  ;;  %v610_v37 = vmax.f32 %v594_v34, %v1241_v6 }
  0xe3   : > { %624 = vst.msk [vmem:[#allocation2 + $0x60] sm:$0xff] %vm611_vm2, %v607_v33 }
  0xe4   : > { %622 = vst.msk [vmem:[#allocation2 + $0x50] sm:$0xff] %vm611_vm2, %v605_v35 }
  0xe5   : > { %v632_v45 = vld [vmem:[#allocation2 + $0x20] ss:$2 sm:$0xff]  ;;  %v648_v38 = vld [vmem:[#allocation2 + $0x21] ss:$2 sm:$0xff]  ;;  %627 = vst.msk [vmem:[#allocation2 + $0x78] sm:$0xff] %vm611_vm2, %v610_v37 }
  0xe6   : > { %v661_v39 = vmax.f32 %v632_v45, %v648_v38  ;;  %v677_v40 = vld [vmem:[#allocation2 + $0x21] ss:$2 sm:$0x7f] }
  0xe7   : > { %v693_v41 = vrot.slane %v677_v40, 7 }
  0xe8   : > { %669 = vst.msk [vmem:[%s1261_s24 + $0x10] sm:$0xff] %vm611_vm2, %v661_v39 }
  0xe9   : > { %v709_v5 = vmax.f32 %v661_v39, %v693_v41 }
  0xea   : > { %v640_v43 = vld [vmem:[#allocation2 + $0x60] ss:$2 sm:$0xff]  ;;  %v656_v6 = vld [vmem:[#allocation2 + $0x61] ss:$2 sm:$0xff] }
  0xeb   : > { %718 = vst.msk [vmem:[%s1261_s24 + $0x10] sm:$0xfe] %vm715_vm3, %v709_v5  ;;  %v638_v44 = vld [vmem:[#allocation2 + $0x50] ss:$2 sm:$0xff]  ;;  %v654_v46 = vld [vmem:[#allocation2 + $0x51] ss:$2 sm:$0xff]  ;;  %v665_v47 = vmax.f32 %v640_v43, %v656_v6 }
  0xec   : > { %v664_v48 = vmax.f32 %v638_v44, %v654_v46  ;;  %v680_v49 = vld [vmem:[#allocation2 + $0x51] ss:$2 sm:$0x7f]  ;;  %v681_v50 = vld [vmem:[#allocation2 + $0x61] ss:$2 sm:$0x7f] }
  0xed   : > { %673 = vst.msk [vmem:[%s1261_s24 + $0x30] sm:$0xff] %vm611_vm2, %v665_v47  ;;  %v696_v52 = vrot.slane %v680_v49, 7  ;;  %v697_v53 = vrot.slane %v681_v50, 7  ;;  %v642_v54 = vld [vmem:[#allocation2 + $0x70] ss:$2 sm:$0xff] }
  0xee   : > { %672 = vst.msk [vmem:[%s1261_s24 + $0x28] sm:$0xff] %vm611_vm2, %v664_v48  ;;  %v658_v36 = vld [vmem:[#allocation2 + $0x71] ss:$2 sm:$0xff] }
  0xef   : > { %v682_v55 = vld [vmem:[#allocation2 + $0x71] ss:$2 sm:$0x7f]  ;;  %v712_v57 = vmax.f32 %v664_v48, %v696_v52  ;;  %v713_v58 = vmax.f32 %v665_v47, %v697_v53  ;;  %v666_v59 = vmax.f32 %v642_v54, %v658_v36 }
  0xf0   : > { %v698_v60 = vrot.slane %v682_v55, 7 }
  0xf1   : > { %721 = vst.msk [vmem:[%s1261_s24 + $0x28] sm:$0xfe] %vm715_vm3, %v712_v57 }
  0xf2   : > { %v714_v62 = vmax.f32 %v666_v59, %v698_v60  ;;  %722 = vst.msk [vmem:[%s1261_s24 + $0x30] sm:$0xfe] %vm715_vm3, %v713_v58 }
  0xf3   : > { %674 = vst.msk [vmem:[%s1261_s24 + $0x38] sm:$0xff] %vm611_vm2, %v666_v59 }
  0xf4   : > { %723 = vst.msk [vmem:[%s1261_s24 + $0x38] sm:$0xfe] %vm715_vm3, %v714_v62 }
  0xf5   : > { %987 = shalt.err (!%p984_p5)
}
  0xf6   : > { %s1040_s21 = smov 128   ;;  %s1041_s22 = smov 8  }
  0xf7   : > { %902 = dma.vmem_to_hbm [thread:$0]  (%p1107_p4), %s740_s6, 1024, %s742_s18, %s725_s7, %s1040_s21, %s1040_s21, %s1041_s22  }
  0xf8 PF: > { %p908_p6 = scmp.ge.s32.totalorder %s1038_s20, 2  ;;  %s756_s24 = sand.u32 1, %s1018_s15  }
  0xf9   : > { %s757_s26 = scalar_lea.sflag [#allocation4], %s756_s24 }
  0xfa   : > { %p905_p7 = pnand %p908_p6, %p1114_p8 }
  0xfc   : > { %p906_p9 = pneg %p905_p7 }
  0xfe   : > { %1013 = dma.done.wait (%p906_p9), %s757_s26, 1024  }
  0xff   : > { %1015 = vsyncadd (%p906_p9), %s757_s26, 4294966272  ;;  %s17_s20 = sadd.s32 1, %s1038_s20   ;;  %s1375_s15 = smov %s1022_s16 }
 0x100   : > { %p14_p10 = scmp.ge.s32.totalorder %s17_s20, 4   ;;  %s1376_s16 = smov %s1026_s17 }
 0x101   : > { %s1377_s17 = smov %s1120_s28  ;;  %s1378_s18 = smov %s1034_s19 }
 0x102   : > { %s1379_s19 = smov %s1381_s23  ;;  %16 = sbr.rel (!%p14_p10) target bundleno = 4 (0x4), region = 89 }
 0x107   :  { %763 = vsyncpa [#allocation4], 1 }
 0x108   :  { %765 = vsyncpa [#allocation4 + $0x1], 1 }

</bundles_post_ra>
